<compile_context>
chip_gen: v7x
topology: tpu7x:2x2x1
jax: 0.10.0
libtpu: 0.0.40
codegen_flags: <defaults>
</compile_context>

<pallas_src>
import functools

import jax
import jax.numpy as jnp
from jax.experimental import pallas as pl
from jax.experimental.pallas import tpu as pltpu

SUBLANE = 8


def _round_up(n, m):
    return (n + m - 1) // m * m


def _cdiv(a, b):
    return (a + b - 1) // b


def _mlp_kernel(x_ref, slab_ref, o_ref, *, p):
    """One batch tile of the fused 3-layer MLP.

    x_ref:    (tb, p)       padded activations for this batch tile
    slab_ref: (3, p+8, p)   slab[l, :p, :] = layer-l weight [in, out] (zero pad)
                            slab[l, p, :]  = layer-l bias (rows p+1..p+7 zero)
    o_ref:    (tb, p)       padded output
    """
    x = x_ref[...]

    l0 = slab_ref[0]
    h = jnp.dot(x, l0[:p, :], preferred_element_type=jnp.float32)
    h = jnp.maximum(h + l0[p:p + 1, :], 0.0)

    l1 = slab_ref[1]
    h = jnp.dot(h, l1[:p, :], preferred_element_type=jnp.float32)
    h = jnp.maximum(h + l1[p:p + 1, :], 0.0)

    l2 = slab_ref[2]
    out = jnp.dot(h, l2[:p, :], preferred_element_type=jnp.float32)
    o_ref[...] = (out + l2[p:p + 1, :]).astype(o_ref.dtype)


def init_params(key, input_features, output_features, hidden_units=8):
    """PyTorch nn.Linear-style init: U(-1/sqrt(fan_in), +1/sqrt(fan_in))."""
    def linear(k, fan_in, fan_out):
        kw, kb = jax.random.split(k)
        bound = 1.0 / jnp.sqrt(fan_in)
        # Stored as [in, out] so the kernel computes x @ w directly.
        w = jax.random.uniform(kw, (fan_in, fan_out), jnp.float32, -bound, bound)
        b = jax.random.uniform(kb, (1, fan_out), jnp.float32, -bound, bound)
        return w, b

    k1, k2, k3 = jax.random.split(key, 3)
    w1, b1 = linear(k1, input_features, hidden_units)
    w2, b2 = linear(k2, hidden_units, hidden_units)
    w3, b3 = linear(k3, hidden_units, output_features)
    return (w1, b1, w2, b2, w3, b3)


def _feature_pad(params):
    """Single padded feature width P (multiple of 8) covering every layer dim."""
    w1, b1, w2, b2, w3, b3 = params
    dims = (w1.shape[0], w1.shape[1], w2.shape[1], w3.shape[1])
    return max(_round_up(d, SUBLANE) for d in dims)


def pack_params(params, p):
    """Pack the 6 tiny weight/bias arrays into one (3, p+8, p) zero-padded slab."""
    def pad_layer(w, b):
        fan_in, fan_out = w.shape
        layer = jnp.zeros((p + SUBLANE, p), jnp.float32)
        layer = layer.at[:fan_in, :fan_out].set(w.astype(jnp.float32))
        layer = layer.at[p, :fan_out].set(b.reshape(-1).astype(jnp.float32))
        return layer

    w1, b1, w2, b2, w3, b3 = params
    return jnp.stack([pad_layer(w1, b1), pad_layer(w2, b2), pad_layer(w3, b3)])


def _pick_batch_tiling(batch, block_rows):
    """Pad B only to a multiple of 8 and split into near-equal tiles.

    Returns (tile_rows, padded_rows).  Padding waste is <= 8 rows per grid
    step (never a full tile), and the grid gets >= 2 steps whenever B >= 16 so
    both v7x TensorCores can be fed via the "parallel" semantics.
    """
    block_rows = max(SUBLANE, _round_up(block_rows, SUBLANE))
    b8 = _round_up(max(batch, 1), SUBLANE)
    steps = _cdiv(b8, block_rows)
    if b8 >= 2 * SUBLANE:
        steps = max(steps, 2)
    tb = _round_up(_cdiv(b8, steps), SUBLANE)   # tb <= block_rows by construction
    return tb, tb * steps


def blob_model_forward(x, params, *, block_rows=8192):
    """Fused MLP forward. x: [B, input_features] f32. Returns [B, output_features]."""
    w1, b1, w2, b2, w3, b3 = params
    B, f_in = x.shape
    hidden = w2.shape[0]
    out_features = w3.shape[1]

    p = _feature_pad(params)          # 8 for the blob model
    slab = pack_params(params, p)

    tb, b_pad = _pick_batch_tiling(B, block_rows)

    # Pad features only to the sublane width and batch to the chosen tiling.
    # Zero lanes hit zero weight rows -> exact zero contribution; padded batch
    # rows pick up bias/ReLU garbage but are sliced off below.
    x_pad = jnp.zeros((b_pad, p), jnp.float32).at[:B, :f_in].set(
        x.astype(jnp.float32))

    grid = (b_pad // tb,)
    flops = 2 * B * (f_in * w1.shape[1] + hidden * hidden + hidden * out_features)
    bytes_accessed = (x_pad.size + slab.size + b_pad * p) * 4

    out_pad = pl.pallas_call(
        functools.partial(_mlp_kernel, p=p),
        out_shape=jax.ShapeDtypeStruct((b_pad, p), jnp.float32),
        grid_spec=pltpu.PrefetchScalarGridSpec(
            num_scalar_prefetch=0,
            grid=grid,
            in_specs=[
                # x: streamed per batch tile (double-buffered by Pallas).
                pl.BlockSpec((tb, p), lambda i: (i, 0)),
                # packed weights/biases: constant index_map -> fetched once and
                # VMEM-resident across the whole grid (re-DMA elided).
                pl.BlockSpec((3, p + SUBLANE, p), lambda i: (0, 0, 0)),
            ],
            out_specs=pl.BlockSpec((tb, p), lambda i: (i, 0)),
        ),
        compiler_params=pltpu.CompilerParams(
            dimension_semantics=("parallel",)),
        cost_estimate=pl.CostEstimate(
            flops=flops, transcendentals=0, bytes_accessed=bytes_accessed),
    )(x_pad, slab)

    return out_pad[:B, :out_features]


def reference_forward(x, params):
    w1, b1, w2, b2, w3, b3 = params
    h = jnp.maximum(x @ w1 + b1, 0.0)
    h = jnp.maximum(h @ w2 + b2, 0.0)
    return h @ w3 + b3


if __name__ == "__main__":
    input_features = 2    # blob dataset: 2-D points
    output_features = 4   # 4 blob classes
    hidden_units = 8

    key = jax.random.PRNGKey(0)
    kx, kx2, kx3, kp = jax.random.split(key, 4)
    params = init_params(kp, input_features, output_features, hidden_units)

    # Tiny single-tile case (batch = 8).
    x = jax.random.normal(kx, (8, input_features), dtype=jnp.float32)
    out = jax.block_until_ready(blob_model_forward(x, params))
    ref = reference_forward(x, params)
    assert out.shape == (8, output_features)
    assert jnp.allclose(out, ref, atol=1e-5, rtol=1e-5)

    # Multi-tile ragged batch with an explicit small tile
    # (B=40 -> 3 grid steps of 16 rows, padded batch = 48).
    x2 = jax.random.normal(kx2, (40, input_features), dtype=jnp.float32)
    out2 = jax.block_until_ready(blob_model_forward(x2, params, block_rows=16))
    ref2 = reference_forward(x2, params)
    assert out2.shape == (40, output_features)
    assert jnp.allclose(out2, ref2, atol=1e-5, rtol=1e-5)

    # Default-tiling ragged batch (B=50 -> 2 grid steps of 32 rows).
    x3 = jax.random.normal(kx3, (50, input_features), dtype=jnp.float32)
    out3 = jax.block_until_ready(blob_model_forward(x3, params))
    ref3 = reference_forward(x3, params)
    assert out3.shape == (50, output_features)
    assert jnp.allclose(out3, ref3, atol=1e-5, rtol=1e-5)

    print("KERNEL_OK")
</pallas_src>

<mosaic_0001>
module attributes {stable_mosaic.version = 11 : i64} {
  func.func @_mlp_kernel(%arg0: i32, %arg1: memref<8x8xf32, #tpu.memory_space<vmem>>, %arg2: memref<3x16x8xf32, #tpu.memory_space<vmem>>, %arg3: memref<8x8xf32, #tpu.memory_space<vmem>>) attributes {dimension_semantics = [#tpu.dimension_semantics<parallel>], iteration_bounds = array<i64: 1>, scalar_prefetch = 0 : i64, scratch_operands = 0 : i64, tpu.core_type = #tpu.core_type<tc>, window_params = [{transform_indices = @transform_0, window_bounds = array<i64: 8, 8>}, {pipeline_mode = #tpu.pipeline_mode<synchronous>, transform_indices = @transform_1, window_bounds = array<i64: 3, 16, 8>}, {transform_indices = @transform_2, window_bounds = array<i64: 8, 8>}]} {
    %c0 = arith.constant 0 : index
    %c0_0 = arith.constant 0 : index
    %0 = vector.load %arg1[%c0, %c0_0] : memref<8x8xf32, #tpu.memory_space<vmem>>, vector<8x8xf32>
    %c0_1 = arith.constant 0 : index
    %c0_2 = arith.constant 0 : index
    %c0_3 = arith.constant 0 : index
    %1 = vector.load %arg2[%c0_1, %c0_2, %c0_3] : memref<3x16x8xf32, #tpu.memory_space<vmem>>, vector<1x16x8xf32>
    %2 = vector.shape_cast %1 : vector<1x16x8xf32> to vector<16x8xf32>
    %3 = vector.extract_strided_slice %2 {offsets = [0, 0], sizes = [8, 8], strides = [1, 1]} : vector<16x8xf32> to vector<8x8xf32>
    %cst = arith.constant dense<0.000000e+00> : vector<8x8xf32>
    %4 = tpu.matmul %0, %3, %cst {dimension_numbers = #tpu.dot_dimension_numbers<[1], [0], [0], [1], [0, 0, 1, 1], [], []>} : vector<8x8xf32>, vector<8x8xf32>, vector<8x8xf32> -> vector<8x8xf32>
    %5 = vector.extract_strided_slice %2 {offsets = [8, 0], sizes = [1, 8], strides = [1, 1]} : vector<16x8xf32> to vector<1x8xf32>
    %6 = vector.broadcast %5 : vector<1x8xf32> to vector<8x8xf32>
    %7 = arith.addf %4, %6 : vector<8x8xf32>
    %cst_4 = arith.constant 0.000000e+00 : f32
    %8 = vector.broadcast %cst_4 : f32 to vector<8x8xf32>
    %9 = arith.maximumf %7, %8 : vector<8x8xf32>
    %c1 = arith.constant 1 : index
    %c0_5 = arith.constant 0 : index
    %c0_6 = arith.constant 0 : index
    %10 = vector.load %arg2[%c1, %c0_5, %c0_6] : memref<3x16x8xf32, #tpu.memory_space<vmem>>, vector<1x16x8xf32>
    %11 = vector.shape_cast %10 : vector<1x16x8xf32> to vector<16x8xf32>
    %12 = vector.extract_strided_slice %11 {offsets = [0, 0], sizes = [8, 8], strides = [1, 1]} : vector<16x8xf32> to vector<8x8xf32>
    %cst_7 = arith.constant dense<0.000000e+00> : vector<8x8xf32>
    %13 = tpu.matmul %9, %12, %cst_7 {dimension_numbers = #tpu.dot_dimension_numbers<[1], [0], [0], [1], [0, 0, 1, 1], [], []>} : vector<8x8xf32>, vector<8x8xf32>, vector<8x8xf32> -> vector<8x8xf32>
    %14 = vector.extract_strided_slice %11 {offsets = [8, 0], sizes = [1, 8], strides = [1, 1]} : vector<16x8xf32> to vector<1x8xf32>
    %15 = vector.broadcast %14 : vector<1x8xf32> to vector<8x8xf32>
    %16 = arith.addf %13, %15 : vector<8x8xf32>
    %cst_8 = arith.constant 0.000000e+00 : f32
    %17 = vector.broadcast %cst_8 : f32 to vector<8x8xf32>
    %18 = arith.maximumf %16, %17 : vector<8x8xf32>
    %c2 = arith.constant 2 : index
    %c0_9 = arith.constant 0 : index
    %c0_10 = arith.constant 0 : index
    %19 = vector.load %arg2[%c2, %c0_9, %c0_10] : memref<3x16x8xf32, #tpu.memory_space<vmem>>, vector<1x16x8xf32>
    %20 = vector.shape_cast %19 : vector<1x16x8xf32> to vector<16x8xf32>
    %21 = vector.extract_strided_slice %20 {offsets = [0, 0], sizes = [8, 8], strides = [1, 1]} : vector<16x8xf32> to vector<8x8xf32>
    %cst_11 = arith.constant dense<0.000000e+00> : vector<8x8xf32>
    %22 = tpu.matmul %18, %21, %cst_11 {dimension_numbers = #tpu.dot_dimension_numbers<[1], [0], [0], [1], [0, 0, 1, 1], [], []>} : vector<8x8xf32>, vector<8x8xf32>, vector<8x8xf32> -> vector<8x8xf32>
    %23 = vector.extract_strided_slice %20 {offsets = [8, 0], sizes = [1, 8], strides = [1, 1]} : vector<16x8xf32> to vector<1x8xf32>
    %24 = vector.broadcast %23 : vector<1x8xf32> to vector<8x8xf32>
    %25 = arith.addf %22, %24 : vector<8x8xf32>
    %c0_12 = arith.constant 0 : index
    %c0_13 = arith.constant 0 : index
    %26 = vector.load %arg3[%c0_12, %c0_13] : memref<8x8xf32, #tpu.memory_space<vmem>>, vector<8x8xf32>
    tpu.vector_store %arg3[%c0_12, %c0_13], %25 {strides = array<i32>} : memref<8x8xf32, #tpu.memory_space<vmem>>, vector<8x8xf32>,
    return
  }
  func.func @transform_0(%arg0: i32) -> (i32, i32) {
    %c0_i32 = arith.constant 0 : i32
    %c0_i32_0 = arith.constant 0 : i32
    return %arg0, %c0_i32 : i32, i32
  }
  func.func @transform_1(%arg0: i32) -> (i32, i32, i32) {
    %c0_i32 = arith.constant 0 : i32
    %c0_i32_0 = arith.constant 0 : i32
    %c0_i32_1 = arith.constant 0 : i32
    %c0_i32_2 = arith.constant 0 : i32
    return %c0_i32, %c0_i32_0, %c0_i32_1 : i32, i32, i32
  }
  func.func @transform_2(%arg0: i32) -> (i32, i32) {
    %c0_i32 = arith.constant 0 : i32
    %c0_i32_0 = arith.constant 0 : i32
    return %arg0, %c0_i32 : i32, i32
  }
}

</mosaic_0001>

<bundles_post_ra>
// kernel: tpu_custom_call.1
= control target key start
LH: loop header
LB: loop body
LE: loop exit
PB: predicated region body
PF: predicated region fallthrough
CT: control target
= control target key end

     0   :  { %vm19_vm0 = vcmask 64512   ;;  %v325_v2 = vmov 0.0   ;;  %vm326_vm1 = vmmov 0   ;;  %s380_s0 = inlined_call_operand.vmem [shape: f32[8,8], index: 0, kind: input, shape index: {}]   ;;  %s381_s1 = inlined_call_operand.vmem [shape: f32[3,16,8], index: 1, kind: input, shape index: {}]   ;;  %s382_s2 = inlined_call_operand.hbm [shape: f32[8,8], index: 2, kind: output, shape index: {}]  }
   0x1   :  { %v13_v0 = vld [vmem:[%s381_s1] sm:$0xff]  ;;  %283 = vmatprep.subr.mxu0 %v325_v2  ;;  %285 = vmatprep.mubr.msk.f32.mxu0 %vm326_vm1, %v325_v2 }
   0x2   :  { %v12_v1 = vld [vmem:[%s380_s0] sm:$0xff] }
   0x3   :  { %7 = vsyncpa [#allocation3], 0  ;;  %284 = vmatpush3.msra.mxu0 %v13_v0  ;;  %288 = vmatprep.subr.mxu1 %v325_v2  ;;  %v271_v3 = vld [vmem:[%s381_s1 + $0x10] sm:$0xff]  ;;  %v15_v4 = vlaneseq  ;;  %v14_v7 = vld [vmem:[%s381_s1 + $0x8] sm:$0xff]  ;;  %s327_s22 = smov [#allocation2]  }
   0x4   :  { %286 = vmatmul.mubr.msk.f32.vlgmr.msra.gmra.mrb[0].mxu0 %vm19_vm0, %v12_v1  ;;  %290 = vmatprep.mubr.msk.f32.mxu1 %vm326_vm1, %v325_v2  ;;  %v274_v13 = vld [vmem:[%s381_s1 + $0x20] sm:$0xff]  ;;  %v272_v14 = vld [vmem:[%s381_s1 + $0x18] sm:$0xff]  ;;  %v275_v20 = vld [vmem:[%s381_s1 + $0x28] sm:$0xff]  ;;  %s262_s23 = sshll.u32 %s327_s22, 4  ;;  %s263_s23 = int_to_ptr.vmem [resolvable:$true] %s262_s23 }
   0x5   :  { %293 = vmatprep.subr.mxu0 %v325_v2  ;;  %295 = vmatprep.mubr.msk.f32.mxu0 %vm326_vm1, %v325_v2  ;;  %v16_v5 = vshrl.u32 %v15_v4, 7  ;;  %s301_s24 = scalar_lea.vmem %s263_s23, 128  ;;  %p306_p1 = scmp.lt.s32.totalorder %s263_s23, %s263_s23 }
   0x6   :  { %289 = vmatpush3.msra.mxu1 %v271_v3  ;;  %294 = vmatpush3.msra.mxu0 %v274_v13  ;;  %p302_p0 = scmp.ne.s32.totalorder %s263_s23, %s301_s24  ;;  %p307_p2 = scmp.lt.s32.totalorder %s301_s24, %s301_s24 }
   0x7   :  { %v17_v6 = vsub.s32 0, %v16_v5 }
   0x8   :  { %p308_p3 = por %p307_p2, %p306_p1 }
   0x9   :  { %v18_v8 = vrot.slane %v14_v7, %v17_v6  ;;  %v100_v15 = vrot.slane %v272_v14, %v17_v6  ;;  %v181_v21 = vrot.slane %v275_v20, %v17_v6 }
   0xa   :  { %p309_p4 = pnand %p308_p3, %p302_p0 }
  0xd7   :  { %v89_v9 = vpop.f32.mrb[0].mxu0 }
  0xd8   :  { %v90_v10 = vadd.f32 %v89_v9, %v18_v8  ;;  %v287_v11 = vpop.f32.mrb[1].mxu0 }
  0xda   :  { %v93_v12 = vmax.f32 %v90_v10, 0.0 }
  0xdc   :  { %291 = vmatmul.mubr.msk.f32.vlgmr.msra.gmra.mrb[0].mxu1 %vm19_vm0, %v93_v12 }
 0x1af   :  { %v170_v16 = vpop.f32.mrb[0].mxu1 }
 0x1b0   :  { %v171_v17 = vadd.f32 %v170_v16, %v100_v15  ;;  %v292_v18 = vpop.f32.mrb[1].mxu1 }
 0x1b2   :  { %v174_v19 = vmax.f32 %v171_v17, 0.0 }
 0x1b4   :  { %296 = vmatmul.mubr.msk.f32.vlgmr.msra.gmra.mrb[2].mxu0 %vm19_vm0, %v174_v19 }
 0x287   :  { %v251_v22 = vpop.f32.mrb[2].mxu0 }
 0x288   :  { %v252_v23 = vadd.f32 %v251_v22, %v181_v21  ;;  %v297_v24 = vpop.f32.mrb[3].mxu0 }
 0x28a   :  { %255 = vst.msk [vmem:[#allocation2] sm:$0xff] %vm19_vm0, %v252_v23 }
 0x28b   :  { %312 = shalt.err (!%p309_p4)
}
 0x28c   :  { %s313_s1 = scalar_lea.hbm %s382_s2, 128 }
 0x28d   :  { %p314_p5 = scmp.ne.s32.totalorder %s382_s2, %s313_s1  ;;  %p317_p6 = scmp.lt.u32.totalorder %s313_s1, %s382_s2 }
 0x28f   :  { %p319_p7 = pnand %p317_p6, %p314_p5 }
 0x291   :  { %322 = shalt.err (!%p319_p7)
}
 0x292   :  { %265 = dma.vmem_to_hbm [thread:$0]  %s263_s23, 128, %s382_s2, [#allocation3]  }
 0x293   :  { %323 = dma.done.wait [#allocation3], 128  }
 0x294   :  { %324 = vsyncadd [#allocation3], 4294967168 }
 0x295   :  { %269 = vsyncpa [#allocation3], 1 }

</bundles_post_ra>
